<compile_context>
chip_gen: v7x
topology: tpu7x:2x2x1
jax: 0.10.0
libtpu: 0.0.40
codegen_flags: <defaults>
</compile_context>

<pallas_src>
import math

import jax
import jax.numpy as jnp
from jax.experimental import pallas as pl
from jax.experimental.pallas import tpu as pltpu


# --------------------------------------------------------------------------
# Generation-aware VMEM budgeting
# --------------------------------------------------------------------------
def _vmem_budget():
    """Return (block_budget_bytes, vmem_limit_bytes) for this chip generation."""
    try:
        cap = int(pltpu.get_tpu_info().vmem_capacity_bytes)
    except Exception:
        cap = 64 * 1024 * 1024  # conservative default (v7x-sized VMEM)
    # ~5/8 of physical VMEM for the double-buffered pipeline blocks and ~3/4
    # as the scoped limit: ~40/48 MiB on v7x, ~80/96 MiB on v5e/v6e.
    return (cap * 5) // 8, (cap * 3) // 4


def _divisors(n):
    ds = set()
    i = 1
    while i * i <= n:
        if n % i == 0:
            ds.add(i)
            ds.add(n // i)
        i += 1
    return sorted(ds)


def _choose_row_tile(lead, total_width, itemsize, block_budget):
    """Largest sublane-aligned row tile whose (in + out, double-buffered)
    blocks fit the VMEM budget.  Prefers tiles that leave >= 2 grid steps
    (keeps both v7x TensorCores busy).  Returns None if nothing fits — the
    caller then falls back to the direct HBM->HBM DMA path instead of
    collapsing to tiny, masked-store tiles."""
    sublane = {4: 8, 2: 16, 1: 32}.get(itemsize, 8)
    cands = [d for d in _divisors(lead) if d % sublane == 0]
    if lead not in cands:
        cands.append(lead)  # full extent is always layout-legal
    per_row = 2 * 2 * total_width * itemsize  # (inputs + output) x 2 buffers
    max_rows = block_budget // max(per_row, 1)
    fits = [c for c in cands if c <= max_rows]
    if not fits:
        return None
    multi = [c for c in fits if lead // c >= 2]
    return max(multi) if multi else max(fits)


# --------------------------------------------------------------------------
# Kernels
# --------------------------------------------------------------------------
def _lane_concat_kernel(*refs):
    """refs = (*in_refs, out_ref); all 2-D (rows, width_i) / (rows, total_width).

    Concat offsets are static multiples of 128 along the lane axis, so every
    write is a wide, unmasked vector store.  Dtype promotion rides the VPU.
    """
    out_ref = refs[-1]
    off = 0
    for r in refs[:-1]:
        w = r.shape[1]
        out_ref[:, off:off + w] = r[...].astype(out_ref.dtype)
        off += w


def _dma_concat_kernel(*refs):
    """refs = (*in_hbm_refs, out_hbm_ref, sem).

    One strided HBM->HBM DMA per input, started back-to-back then all waited:
    no VMEM staging, no lane-masked stores, no VMEM capacity pressure.
    """
    sem = refs[-1]
    out_ref = refs[-2]
    copies = []
    off = 0
    for i, r in enumerate(refs[:-2]):
        s = r.shape[1]
        cp = pltpu.make_async_copy(r, out_ref.at[:, pl.ds(off, s), :], sem.at[i])
        cp.start()
        copies.append(cp)
        off += s
    for cp in copies:
        cp.wait()


# --------------------------------------------------------------------------
# Wrapper (== Concat.forward)
# --------------------------------------------------------------------------
def concat(xs, dimension=1):
    """Equivalent of Concat.forward: torch.cat(xs, dimension) for JAX arrays."""
    assert len(xs) >= 1
    nd = xs[0].ndim
    d = dimension if dimension >= 0 else dimension + nd
    base = xs[0].shape
    for x in xs:
        assert x.ndim == nd
        assert x.shape[:d] == base[:d] and x.shape[d + 1:] == base[d + 1:], \
            "all input shapes must match except along the concat dimension"

    dtype = jnp.result_type(*[x.dtype for x in xs])
    itemsize = jnp.dtype(dtype).itemsize

    lead = int(math.prod(base[:d]))
    inner = int(math.prod(base[d + 1:]))
    sizes = [int(x.shape[d]) for x in xs]
    s_total = sum(sizes)
    out_full_shape = base[:d] + (s_total,) + base[d + 1:]

    if len(xs) == 1:
        return xs[0].astype(dtype)

    block_budget, vmem_limit = _vmem_budget()

    tile_r = None
    if inner > 0 and inner % 128 == 0:
        tile_r = _choose_row_tile(lead, s_total * inner, itemsize, block_budget)

    if tile_r is not None:
        # ---- Path A: lane-axis concat with lane-dense stores --------------
        widths = [s * inner for s in sizes]
        total_w = s_total * inner
        xs2 = [x.reshape(lead, w) for x, w in zip(xs, widths)]  # contiguous, free
        grid = (lead // tile_r,)
        in_specs = [pl.BlockSpec((tile_r, w), lambda r: (r, 0)) for w in widths]
        out_spec = pl.BlockSpec((tile_r, total_w), lambda r: (r, 0))
        out2 = pl.pallas_call(
            _lane_concat_kernel,
            out_shape=jax.ShapeDtypeStruct((lead, total_w), dtype),
            grid=grid,
            in_specs=in_specs,
            out_specs=out_spec,
            compiler_params=pltpu.CompilerParams(
                dimension_semantics=("parallel",),
                vmem_limit_bytes=int(vmem_limit)),
        )(*xs2)
        return out2.reshape(out_full_shape)

    # ---- Path B: direct HBM->HBM DMA (small / odd inner, or oversized rows)
    # DMA cannot convert dtypes, so only mismatched inputs are cast here.
    xs3 = [x.astype(dtype).reshape(lead, s, inner) for x, s in zip(xs, sizes)]
    out3 = pl.pallas_call(
        _dma_concat_kernel,
        out_shape=jax.ShapeDtypeStruct((lead, s_total, inner), dtype),
        in_specs=[pl.BlockSpec(memory_space=pl.ANY)] * len(xs3),
        out_specs=pl.BlockSpec(memory_space=pl.ANY),
        scratch_shapes=[pltpu.SemaphoreType.DMA((len(xs3),))],
    )(*xs3)
    return out3.reshape(out_full_shape)


if __name__ == "__main__":
    key = jax.random.PRNGKey(0)
    k1, k2, k3 = jax.random.split(key, 3)

    # YOLO-style channel concat (dim=1): inner = 16*16 = 256 -> lane-dense path.
    x1 = jax.random.normal(k1, (2, 4, 16, 16), jnp.float32)
    x2 = jax.random.normal(k2, (2, 8, 16, 16), jnp.float32)
    x3 = jax.random.normal(k3, (2, 4, 16, 16), jnp.float32)
    out = jax.block_until_ready(concat([x1, x2, x3], dimension=1))
    ref = jnp.concatenate([x1, x2, x3], axis=1)
    assert out.shape == (2, 16, 16, 16)
    assert jnp.array_equal(out, ref), "mismatch vs jnp.concatenate (dim=1)"

    # Spatial concat (dim=2): inner = 16 (not a multiple of 128) -> DMA path.
    y1 = jax.random.normal(k1, (2, 4, 16, 16), jnp.float32)
    y2 = jax.random.normal(k2, (2, 4, 8, 16), jnp.float32)
    out2 = jax.block_until_ready(concat([y1, y2], dimension=2))
    ref2 = jnp.concatenate([y1, y2], axis=2)
    assert out2.shape == (2, 4, 24, 16)
    assert jnp.array_equal(out2, ref2), "mismatch vs jnp.concatenate (dim=2)"

    print("KERNEL_OK")
</pallas_src>

<mosaic_0001>
module attributes {stable_mosaic.version = 11 : i64} {
  func.func @_lane_concat_kernel(%arg0: i32, %arg1: memref<2x1024xf32, #tpu.memory_space<vmem>>, %arg2: memref<2x2048xf32, #tpu.memory_space<vmem>>, %arg3: memref<2x1024xf32, #tpu.memory_space<vmem>>, %arg4: memref<2x4096xf32, #tpu.memory_space<vmem>>) attributes {dimension_semantics = [#tpu.dimension_semantics<parallel>], iteration_bounds = array<i64: 1>, scalar_prefetch = 0 : i64, scratch_operands = 0 : i64, tpu.core_type = #tpu.core_type<tc>, window_params = [{transform_indices = @transform_0, window_bounds = array<i64: 2, 1024>}, {transform_indices = @transform_1, window_bounds = array<i64: 2, 2048>}, {transform_indices = @transform_2, window_bounds = array<i64: 2, 1024>}, {transform_indices = @transform_3, window_bounds = array<i64: 2, 4096>}]} {
    %c0 = arith.constant 0 : index
    %c0_0 = arith.constant 0 : index
    %0 = vector.load %arg1[%c0, %c0_0] : memref<2x1024xf32, #tpu.memory_space<vmem>>, vector<2x1024xf32>
    %c0_1 = arith.constant 0 : index
    %c0_2 = arith.constant 0 : index
    %1 = vector.load %arg4[%c0_1, %c0_2] : memref<2x4096xf32, #tpu.memory_space<vmem>>, vector<2x1024xf32>
    tpu.vector_store %arg4[%c0_1, %c0_2], %0 {strides = array<i32>} : memref<2x4096xf32, #tpu.memory_space<vmem>>, vector<2x1024xf32>,
    %c0_3 = arith.constant 0 : index
    %c0_4 = arith.constant 0 : index
    %2 = vector.load %arg2[%c0_3, %c0_4] : memref<2x2048xf32, #tpu.memory_space<vmem>>, vector<2x2048xf32>
    %c0_5 = arith.constant 0 : index
    %c1024 = arith.constant 1024 : index
    %3 = vector.load %arg4[%c0_5, %c1024] : memref<2x4096xf32, #tpu.memory_space<vmem>>, vector<2x2048xf32>
    tpu.vector_store %arg4[%c0_5, %c1024], %2 {strides = array<i32>} : memref<2x4096xf32, #tpu.memory_space<vmem>>, vector<2x2048xf32>,
    %c0_6 = arith.constant 0 : index
    %c0_7 = arith.constant 0 : index
    %4 = vector.load %arg3[%c0_6, %c0_7] : memref<2x1024xf32, #tpu.memory_space<vmem>>, vector<2x1024xf32>
    %c0_8 = arith.constant 0 : index
    %c3072 = arith.constant 3072 : index
    %5 = vector.load %arg4[%c0_8, %c3072] : memref<2x4096xf32, #tpu.memory_space<vmem>>, vector<2x1024xf32>
    tpu.vector_store %arg4[%c0_8, %c3072], %4 {strides = array<i32>} : memref<2x4096xf32, #tpu.memory_space<vmem>>, vector<2x1024xf32>,
    return
  }
  func.func @transform_0(%arg0: i32) -> (i32, i32) {
    %c0_i32 = arith.constant 0 : i32
    %c0_i32_0 = arith.constant 0 : i32
    return %arg0, %c0_i32 : i32, i32
  }
  func.func @transform_1(%arg0: i32) -> (i32, i32) {
    %c0_i32 = arith.constant 0 : i32
    %c0_i32_0 = arith.constant 0 : i32
    return %arg0, %c0_i32 : i32, i32
  }
  func.func @transform_2(%arg0: i32) -> (i32, i32) {
    %c0_i32 = arith.constant 0 : i32
    %c0_i32_0 = arith.constant 0 : i32
    return %arg0, %c0_i32 : i32, i32
  }
  func.func @transform_3(%arg0: i32) -> (i32, i32) {
    %c0_i32 = arith.constant 0 : i32
    %c0_i32_0 = arith.constant 0 : i32
    return %arg0, %c0_i32 : i32, i32
  }
}

</mosaic_0001>

<bundles_post_ra>
// kernel: tpu_custom_call.1
= control target key start
LH: loop header
LB: loop body
LE: loop exit
PB: predicated region body
PF: predicated region fallthrough
CT: control target
= control target key end

     0   :  { %8 = vsyncpa [#allocation3], 0  ;;  %s252_s0 = inlined_call_operand.hbm [shape: f32[2,1024], index: 0, kind: input, shape index: {}]   ;;  %s253_s1 = inlined_call_operand.hbm [shape: f32[2,2048], index: 1, kind: input, shape index: {}]   ;;  %s254_s2 = inlined_call_operand.hbm [shape: f32[2,1024], index: 2, kind: input, shape index: {}]   ;;  %s255_s3 = inlined_call_operand.hbm [shape: f32[2,4096], index: 3, kind: output, shape index: {}]  }
   0x1   :  { %9 = vsyncpa [#allocation6], 0 }
   0x2   :  { %10 = vsyncpa [#allocation4], 0  ;;  %s180_s12 = smov [#allocation5]   ;;  %s181_s14 = smov [#allocation2]  }
   0x3   :  { %s27_s13 = sshll.u32 %s180_s12, 4  ;;  %s17_s15 = sshll.u32 %s181_s14, 4  ;;  %s28_s13 = int_to_ptr.vmem [resolvable:$true] %s27_s13  ;;  %s18_s15 = int_to_ptr.vmem [resolvable:$true] %s17_s15 }
   0x4   :  { %s86_s18 = scalar_lea.hbm %s253_s1, 512 }
   0x5   :  { %p87_p0 = scmp.ne.s32.totalorder %s253_s1, %s86_s18  ;;  %p90_p1 = scmp.lt.u32.totalorder %s86_s18, %s253_s1 }
   0x7   :  { %p92_p2 = pnand %p90_p1, %p87_p0 }
   0x9   :  { %95 = shalt.err (!%p92_p2)
}
   0xa   :  { %s96_s23 = scalar_lea.vmem %s28_s13, 512  ;;  %p101_p4 = scmp.lt.s32.totalorder %s28_s13, %s28_s13 }
   0xb   :  { %p97_p3 = scmp.ne.s32.totalorder %s28_s13, %s96_s23  ;;  %p102_p5 = scmp.lt.s32.totalorder %s96_s23, %s96_s23 }
   0xd   :  { %p103_p6 = por %p102_p5, %p101_p4 }
   0xf   :  { %p104_p7 = pnand %p103_p6, %p97_p3 }
  0x11   :  { %107 = shalt.err (!%p104_p7)
}
  0x12   :  { %30 = dma.hbm_to_vmem [thread:$0]  %s253_s1, 512, %s28_s13, [#allocation6]  }
  0x13   :  { %s108_s28 = scalar_lea.hbm %s252_s0, 256 }
  0x14   :  { %p109_p8 = scmp.ne.s32.totalorder %s252_s0, %s108_s28  ;;  %p112_p9 = scmp.lt.u32.totalorder %s108_s28, %s252_s0 }
  0x16   :  { %p114_p10 = pnand %p112_p9, %p109_p8 }
  0x18   :  { %117 = shalt.err (!%p114_p10)
}
  0x19   :  { %s118_s6 = scalar_lea.vmem %s18_s15, 256  ;;  %p123_p12 = scmp.lt.s32.totalorder %s18_s15, %s18_s15 }
  0x1a   :  { %p119_p11 = scmp.ne.s32.totalorder %s18_s15, %s118_s6  ;;  %p124_p13 = scmp.lt.s32.totalorder %s118_s6, %s118_s6 }
  0x1c   :  { %p125_p0 = por %p124_p13, %p123_p12 }
  0x1e   :  { %p126_p1 = pnand %p125_p0, %p119_p11 }
  0x20   :  { %129 = shalt.err (!%p126_p1)
}
  0x21   :  { %20 = dma.hbm_to_vmem [thread:$0]  %s252_s0, 256, %s18_s15, [#allocation3]  }
  0x22   :  { %s182_s8 = smov [#allocation7]   ;;  %s130_s12 = scalar_lea.hbm %s254_s2, 256 }
  0x23   :  { %s37_s9 = sshll.u32 %s182_s8, 4  ;;  %p131_p2 = scmp.ne.s32.totalorder %s254_s2, %s130_s12  ;;  %s38_s9 = int_to_ptr.vmem [resolvable:$true] %s37_s9 }
  0x24   :  { %p134_p3 = scmp.lt.u32.totalorder %s130_s12, %s254_s2 }
  0x26   :  { %p136_p4 = pnand %p134_p3, %p131_p2 }
  0x28   :  { %139 = shalt.err (!%p136_p4)
}
  0x29   :  { %s140_s18 = scalar_lea.vmem %s38_s9, 256  ;;  %p145_p6 = scmp.lt.s32.totalorder %s38_s9, %s38_s9 }
  0x2a   :  { %p141_p5 = scmp.ne.s32.totalorder %s38_s9, %s140_s18  ;;  %p146_p7 = scmp.lt.s32.totalorder %s140_s18, %s140_s18 }
  0x2c   :  { %p147_p8 = por %p146_p7, %p145_p6 }
  0x2e   :  { %p148_p9 = pnand %p147_p8, %p141_p5 }
  0x30   :  { %151 = shalt.err (!%p148_p9)
}
  0x31   :  { %40 = dma.hbm_to_vmem [thread:$0]  %s254_s2, 256, %s38_s9, [#allocation6]  }
  0x32   :  { %174 = dma.done.wait [#allocation3], 256  }
  0x33   :  { %175 = vsyncadd [#allocation3], 4294967040 }
  0x34   :  { %176 = dma.done.wait [#allocation6], 768  }
  0x35   :  { %177 = vsyncadd [#allocation6], 4294966528  ;;  %s183_s19 = smov [#allocation8]   ;;  %v50_v0 = vld [vmem:[#allocation2] sm:$0xff]  ;;  %v51_v1 = vld [vmem:[#allocation2 + $0x8] sm:$0xff] }
  0x36   :  { %s72_s20 = sshll.u32 %s183_s19, 4  ;;  %v54_v2 = vld [vmem:[#allocation5] sm:$0xff]  ;;  %52 = vst [vmem:[#allocation8] sm:$0xff] %v50_v0  ;;  %53 = vst [vmem:[#allocation8 + $0x8] sm:$0xff] %v51_v1  ;;  %v55_v3 = vld [vmem:[#allocation5 + $0x8] sm:$0xff]  ;;  %s73_s20 = int_to_ptr.vmem [resolvable:$true] %s72_s20 }
  0x37   :  { %58 = vst [vmem:[#allocation8 + $0x10] sm:$0xff] %v54_v2  ;;  %v56_v4 = vld [vmem:[#allocation5 + $0x10] sm:$0xff]  ;;  %v57_v5 = vld [vmem:[#allocation5 + $0x18] sm:$0xff]  ;;  %59 = vst [vmem:[#allocation8 + $0x18] sm:$0xff] %v55_v3  ;;  %s152_s2 = scalar_lea.vmem %s73_s20, 1024  ;;  %p157_p11 = scmp.lt.s32.totalorder %s73_s20, %s73_s20 }
  0x38   :  { %60 = vst [vmem:[#allocation8 + $0x20] sm:$0xff] %v56_v4  ;;  %61 = vst [vmem:[#allocation8 + $0x28] sm:$0xff] %v57_v5  ;;  %v62_v6 = vld [vmem:[#allocation7] sm:$0xff]  ;;  %v63_v7 = vld [vmem:[#allocation7 + $0x8] sm:$0xff]  ;;  %p153_p10 = scmp.ne.s32.totalorder %s73_s20, %s152_s2  ;;  %p158_p12 = scmp.lt.s32.totalorder %s152_s2, %s152_s2 }
  0x39   :  { %64 = vst [vmem:[#allocation8 + $0x30] sm:$0xff] %v62_v6  ;;  %65 = vst [vmem:[#allocation8 + $0x38] sm:$0xff] %v63_v7 }
  0x3a   :  { %p159_p13 = por %p158_p12, %p157_p11 }
  0x3c   :  { %p160_p0 = pnand %p159_p13, %p153_p10 }
  0x3e   :  { %163 = shalt.err (!%p160_p0)
}
  0x3f   :  { %s164_s23 = scalar_lea.hbm %s255_s3, 1024 }
  0x40   :  { %p165_p1 = scmp.ne.s32.totalorder %s255_s3, %s164_s23  ;;  %p168_p2 = scmp.lt.u32.totalorder %s164_s23, %s255_s3 }
  0x42   :  { %p170_p3 = pnand %p168_p2, %p165_p1 }
  0x44   :  { %173 = shalt.err (!%p170_p3)
}
  0x45   :  { %75 = dma.vmem_to_hbm [thread:$0]  %s73_s20, 1024, %s255_s3, [#allocation4]  }
  0x46   :  { %178 = dma.done.wait [#allocation4], 1024  }
  0x47   :  { %179 = vsyncadd [#allocation4], 4294966272 }
  0x48   :  { %79 = vsyncpa [#allocation3], 1 }
  0x49   :  { %80 = vsyncpa [#allocation6], 1 }
  0x4a   :  { %81 = vsyncpa [#allocation4], 1 }

</bundles_post_ra>
